<compile_context>
chip_gen: v5e
topology: v5e:2x2
jax: 0.10.0
libtpu: 0.0.40
codegen_flags: <defaults>
</compile_context>

<pallas_src>
import functools

import jax
import jax.numpy as jnp
from jax.experimental import pallas as pl
from jax.experimental.pallas import tpu as pltpu

LN_EPS = 1e-5  # nn.LayerNorm default


def _round_up(x, m):
    return ((x + m - 1) // m) * m


def _cdiv(a, b):
    return (a + b - 1) // b


def _device_kind():
    try:
        return jax.devices()[0].device_kind.lower()
    except Exception:  # pragma: no cover - defensive
        return ""


def _num_tensorcores():
    # v7x exposes 2 TensorCores per chip; v5e/v6e have 1.
    return 2 if "v7" in _device_kind() else 1


# ---------------------------------------------------------------------------
# Kernel
# ---------------------------------------------------------------------------
def dynamic_pos_bias_kernel(x_ref, wp_ref, w12_ref, w3_ref, c3_ref, vec_ref,
                            o_ref, *, residual, vpu_proj):
    """Feature-major DynamicPosBias forward (N on the 128-lane axis).

    x_ref   : (3, TN)                 [coords^T ; ones] (bias row folded in)
    wp_ref  : (pos_dim, 3)            [pos_proj W^T | bp]
    w12_ref : (2, pos_dim, pos_dim)   pos1/pos2 Linear weights, W^T
    w3_ref  : (nh_pad, pos_dim)       pos3 Linear weight, W^T, rows zero-padded
    c3_ref  : (nh_pad, 1)             pos3 bias, zero-padded
    vec_ref : (8, pos_dim, 1)         [g1, be1, c1, g2, be2, c2, g3, be3]
    o_ref   : (nh_pad, TN)
    """
    x = x_ref[...]
    wp = wp_ref[...]

    g1, be1, c1 = vec_ref[0], vec_ref[1], vec_ref[2]
    g2, be2, c2 = vec_ref[3], vec_ref[4], vec_ref[5]
    g3, be3 = vec_ref[6], vec_ref[7]

    if vpu_proj:
        # v5e/v6e: the K=3 projection is cheaper as broadcast FMAs on the VPU
        # than pushing/draining the MXU result FIFO.
        h = (wp[:, 0:1] * x[0:1, :]
             + wp[:, 1:2] * x[1:2, :]
             + wp[:, 2:3])                      # folded bias term
    else:
        # v7x (MRB): keep it on the MXU; ones row carries the bias.
        h = jnp.dot(wp, x, preferred_element_type=jnp.float32,
                    precision=jax.lax.Precision.HIGHEST)

    def ln_relu_linear(h, g, b, w, c):
        # LayerNorm over the feature (sublane) axis, centered two-pass variance.
        mu = jnp.mean(h, axis=0, keepdims=True)
        d = h - mu
        var = jnp.mean(d * d, axis=0, keepdims=True)
        hn = d * jax.lax.rsqrt(var + LN_EPS) * g + b
        hr = jnp.maximum(hn, 0.0)
        return jnp.dot(w, hr, preferred_element_type=jnp.float32,
                       precision=jax.lax.Precision.HIGHEST) + c

    w1 = w12_ref[0]
    w2 = w12_ref[1]
    if residual:
        h = h + ln_relu_linear(h, g1, be1, w1, c1)
        h = h + ln_relu_linear(h, g2, be2, w2, c2)
    else:
        h = ln_relu_linear(h, g1, be1, w1, c1)
        h = ln_relu_linear(h, g2, be2, w2, c2)
    out = ln_relu_linear(h, g3, be3, w3_ref[...], c3_ref[...])

    o_ref[...] = out.astype(o_ref.dtype)


# ---------------------------------------------------------------------------
# One-time parameter packing (hoisted off the per-call path).
# ---------------------------------------------------------------------------
def pack_params(params, num_heads):
    """Pack the 14 tiny parameter tensors into 5 kernel-ready slabs.

    Call once; reuse the result across every forward call.
    """
    pos_dim = params["wp"].shape[1]
    nh_pad = _round_up(num_heads, 8)

    wp_t = jnp.concatenate(
        [params["wp"].T.astype(jnp.float32),
         params["bp"].reshape(pos_dim, 1).astype(jnp.float32)], axis=1)  # (pos_dim, 3)
    w12 = jnp.stack([params["w1"].T, params["w2"].T]).astype(jnp.float32)
    w3_t = jnp.pad(params["w3"].T.astype(jnp.float32),
                   ((0, nh_pad - num_heads), (0, 0)))
    c3 = jnp.pad(params["c3"].reshape(num_heads, 1).astype(jnp.float32),
                 ((0, nh_pad - num_heads), (0, 0)))
    vec = jnp.stack(
        [params[nm].reshape(pos_dim, 1).astype(jnp.float32)
         for nm in ("g1", "be1", "c1", "g2", "be2", "c2", "g3", "be3")])  # (8, pos_dim, 1)

    return {"wp_t": wp_t, "w12": w12, "w3_t": w3_t, "c3": c3, "vec": vec}


# ---------------------------------------------------------------------------
# Per-call wrapper
# ---------------------------------------------------------------------------
def dynamic_pos_bias(biases, packed, *, num_heads, residual,
                     heads_major=False, max_tile_n=32768, pos_proj_on_vpu=None):
    """DynamicPosBias forward on TPU via Pallas.

    biases: (N, 2) float32.
    packed: output of pack_params().
    Returns (num_heads, N) if heads_major else (N, num_heads), float32.
    """
    n, two = biases.shape
    assert two == 2
    pos_dim = packed["wp_t"].shape[0]
    nh_pad = packed["w3_t"].shape[0]

    if pos_proj_on_vpu is None:
        pos_proj_on_vpu = "v7" not in _device_kind()   # v5e / v6e -> VPU FMAs

    # ---- lane tiling -------------------------------------------------------
    n128 = _round_up(n, 128)
    blocks = max(1, _cdiv(n128, max_tile_n))
    ncores = _num_tensorcores()
    if ncores >= 2 and n128 >= 2 * 512:
        # Give every TensorCore at least one grid step (megacore sharding);
        # keep the step count a multiple of the core count.
        blocks = _round_up(max(blocks, ncores), ncores)
    tile_n = _round_up(_cdiv(n128, blocks), 128)
    n_pad = blocks * tile_n
    grid = (blocks,)

    # ---- per-call input prep: transpose + ones row + lane pad only ----------
    x_t = jnp.concatenate(
        [biases.astype(jnp.float32).T,
         jnp.ones((1, n), jnp.float32)], axis=0)                 # (3, N)
    x_t = jnp.pad(x_t, ((0, 0), (0, n_pad - n)))                 # (3, n_pad)

    in_specs = [
        pl.BlockSpec((3, tile_n), lambda i: (0, i)),                 # x (lane-tiled)
        pl.BlockSpec((pos_dim, 3), lambda i: (0, 0)),                # [wp^T | bp]
        pl.BlockSpec((2, pos_dim, pos_dim), lambda i: (0, 0, 0)),    # w1^T, w2^T
        pl.BlockSpec((nh_pad, pos_dim), lambda i: (0, 0)),           # w3^T (padded)
        pl.BlockSpec((nh_pad, 1), lambda i: (0, 0)),                 # c3 (padded)
        pl.BlockSpec((8, pos_dim, 1), lambda i: (0, 0, 0)),          # vector slab
    ]
    out_spec = pl.BlockSpec((nh_pad, tile_n), lambda i: (0, i))

    # Advisory cost so XLA schedules surrounding tiny ops tightly around us.
    flops = 2 * n_pad * pos_dim * (3 + 2 * pos_dim + nh_pad)
    bytes_accessed = 4 * (n_pad * (3 + nh_pad)
                          + pos_dim * (3 + 2 * pos_dim)
                          + nh_pad * (pos_dim + 1)
                          + 8 * pos_dim)
    cost = pl.CostEstimate(flops=int(flops),
                           transcendentals=int(3 * n_pad),
                           bytes_accessed=int(bytes_accessed))

    out = pl.pallas_call(
        functools.partial(dynamic_pos_bias_kernel,
                          residual=residual, vpu_proj=pos_proj_on_vpu),
        out_shape=jax.ShapeDtypeStruct((nh_pad, n_pad), jnp.float32),
        grid_spec=pltpu.PrefetchScalarGridSpec(
            num_scalar_prefetch=0,
            grid=grid,
            in_specs=in_specs,
            out_specs=out_spec,
        ),
        compiler_params=pltpu.CompilerParams(
            dimension_semantics=("parallel",)),
        cost_estimate=cost,
    )(x_t, packed["wp_t"], packed["w12"], packed["w3_t"], packed["c3"],
      packed["vec"])

    out = out[:num_heads, :n]                 # heads-major, lane-dense
    return out if heads_major else out.T      # PyTorch layout: (N, num_heads)


# ---------------------------------------------------------------------------
# Pure-JAX reference (mirrors the PyTorch forward) for correctness checking.
# ---------------------------------------------------------------------------
def _ref_block(h, g, b, w, c):
    mu = jnp.mean(h, axis=-1, keepdims=True)
    var = jnp.mean((h - mu) ** 2, axis=-1, keepdims=True)
    hn = (h - mu) / jnp.sqrt(var + LN_EPS) * g + b
    return jnp.maximum(hn, 0.0) @ w + c


def dynamic_pos_bias_ref(biases, p, *, residual):
    h = biases @ p["wp"] + p["bp"]
    if residual:
        h = h + _ref_block(h, p["g1"], p["be1"], p["w1"], p["c1"])
        h = h + _ref_block(h, p["g2"], p["be2"], p["w2"], p["c2"])
        return _ref_block(h, p["g3"], p["be3"], p["w3"], p["c3"])
    h = _ref_block(h, p["g1"], p["be1"], p["w1"], p["c1"])
    h = _ref_block(h, p["g2"], p["be2"], p["w2"], p["c2"])
    return _ref_block(h, p["g3"], p["be3"], p["w3"], p["c3"])


def make_params(key, dim, num_heads):
    pos_dim = dim // 4
    ks = jax.random.split(key, 8)
    scale = 0.1
    return {
        "wp": scale * jax.random.normal(ks[0], (2, pos_dim), jnp.float32),
        "bp": scale * jax.random.normal(ks[1], (1, pos_dim), jnp.float32),
        # LayerNorm affine init: gamma=1, beta=0 (PyTorch default)
        "g1": jnp.ones((1, pos_dim), jnp.float32),
        "be1": jnp.zeros((1, pos_dim), jnp.float32),
        "w1": scale * jax.random.normal(ks[2], (pos_dim, pos_dim), jnp.float32),
        "c1": scale * jax.random.normal(ks[3], (1, pos_dim), jnp.float32),
        "g2": jnp.ones((1, pos_dim), jnp.float32),
        "be2": jnp.zeros((1, pos_dim), jnp.float32),
        "w2": scale * jax.random.normal(ks[4], (pos_dim, pos_dim), jnp.float32),
        "c2": scale * jax.random.normal(ks[5], (1, pos_dim), jnp.float32),
        "g3": jnp.ones((1, pos_dim), jnp.float32),
        "be3": jnp.zeros((1, pos_dim), jnp.float32),
        "w3": scale * jax.random.normal(ks[6], (pos_dim, num_heads), jnp.float32),
        "c3": scale * jax.random.normal(ks[7], (1, num_heads), jnp.float32),
    }


if __name__ == "__main__":
    dim = 32          # -> pos_dim = 8
    num_heads = 4
    window = 8        # relative-position grid: (2*8-1)^2 = 225 coordinate pairs
    n = (2 * window - 1) ** 2

    key = jax.random.PRNGKey(0)
    k_params, k_x = jax.random.split(key)
    params = make_params(k_params, dim, num_heads)

    # One-time packing (hoisted off the per-call path).
    packed = pack_params(params, num_heads)

    # Relative-coordinate "biases" input, shape (N, 2), like the swin-style caller.
    coords = jnp.stack(jnp.meshgrid(
        jnp.arange(-(window - 1), window, dtype=jnp.float32),
        jnp.arange(-(window - 1), window, dtype=jnp.float32),
        indexing="ij"), axis=-1).reshape(-1, 2)
    biases = coords + 0.01 * jax.random.normal(k_x, coords.shape, jnp.float32)

    ref_true = dynamic_pos_bias_ref(biases, params, residual=True)
    ref_false = dynamic_pos_bias_ref(biases, params, residual=False)

    for residual, ref in ((True, ref_true), (False, ref_false)):
        # PyTorch-layout output (N, num_heads)
        out = dynamic_pos_bias(biases, packed,
                               num_heads=num_heads, residual=residual)
        out = jax.block_until_ready(out)
        assert out.shape == (n, num_heads)
        assert jnp.allclose(out, ref, atol=1e-4, rtol=1e-4), \
            f"mismatch vs reference (residual={residual})"

        # Heads-major output (num_heads, N) -- no trailing transpose.
        out_hm = dynamic_pos_bias(biases, packed, num_heads=num_heads,
                                  residual=residual, heads_major=True)
        out_hm = jax.block_until_ready(out_hm)
        assert out_hm.shape == (num_heads, n)
        assert jnp.allclose(out_hm, ref.T, atol=1e-4, rtol=1e-4), \
            f"heads-major mismatch vs reference (residual={residual})"

    print("KERNEL_OK")
</pallas_src>

<mosaic_0001>
module attributes {stable_mosaic.version = 11 : i64} {
  func.func @dynamic_pos_bias_kernel(%arg0: i32, %arg1: memref<3x256xf32, #tpu.memory_space<vmem>>, %arg2: memref<8x3xf32, #tpu.memory_space<vmem>>, %arg3: memref<2x8x8xf32, #tpu.memory_space<vmem>>, %arg4: memref<8x8xf32, #tpu.memory_space<vmem>>, %arg5: memref<8x1xf32, #tpu.memory_space<vmem>>, %arg6: memref<8x8x1xf32, #tpu.memory_space<vmem>>, %arg7: memref<8x256xf32, #tpu.memory_space<vmem>>) attributes {dimension_semantics = [#tpu.dimension_semantics<parallel>], iteration_bounds = array<i64: 1>, scalar_prefetch = 0 : i64, scratch_operands = 0 : i64, tpu.core_type = #tpu.core_type<tc>, window_params = [{transform_indices = @transform_0, window_bounds = array<i64: 3, 256>}, {pipeline_mode = #tpu.pipeline_mode<synchronous>, transform_indices = @transform_1, window_bounds = array<i64: 8, 3>}, {pipeline_mode = #tpu.pipeline_mode<synchronous>, transform_indices = @transform_2, window_bounds = array<i64: 2, 8, 8>}, {pipeline_mode = #tpu.pipeline_mode<synchronous>, transform_indices = @transform_3, window_bounds = array<i64: 8, 8>}, {pipeline_mode = #tpu.pipeline_mode<synchronous>, transform_indices = @transform_4, window_bounds = array<i64: 8, 1>}, {pipeline_mode = #tpu.pipeline_mode<synchronous>, transform_indices = @transform_5, window_bounds = array<i64: 8, 8, 1>}, {transform_indices = @transform_6, window_bounds = array<i64: 8, 256>}]} {
    %c0 = arith.constant 0 : index
    %c0_0 = arith.constant 0 : index
    %0 = vector.load %arg1[%c0, %c0_0] : memref<3x256xf32, #tpu.memory_space<vmem>>, vector<3x256xf32>
    %c0_1 = arith.constant 0 : index
    %c0_2 = arith.constant 0 : index
    %1 = vector.load %arg2[%c0_1, %c0_2] : memref<8x3xf32, #tpu.memory_space<vmem>>, vector<8x3xf32>
    %c0_3 = arith.constant 0 : index
    %c0_4 = arith.constant 0 : index
    %c0_5 = arith.constant 0 : index
    %2 = vector.load %arg6[%c0_3, %c0_4, %c0_5] : memref<8x8x1xf32, #tpu.memory_space<vmem>>, vector<1x8x1xf32>
    %3 = vector.shape_cast %2 : vector<1x8x1xf32> to vector<8x1xf32>
    %c1 = arith.constant 1 : index
    %c0_6 = arith.constant 0 : index
    %c0_7 = arith.constant 0 : index
    %4 = vector.load %arg6[%c1, %c0_6, %c0_7] : memref<8x8x1xf32, #tpu.memory_space<vmem>>, vector<1x8x1xf32>
    %5 = vector.shape_cast %4 : vector<1x8x1xf32> to vector<8x1xf32>
    %c2 = arith.constant 2 : index
    %c0_8 = arith.constant 0 : index
    %c0_9 = arith.constant 0 : index
    %6 = vector.load %arg6[%c2, %c0_8, %c0_9] : memref<8x8x1xf32, #tpu.memory_space<vmem>>, vector<1x8x1xf32>
    %7 = vector.shape_cast %6 : vector<1x8x1xf32> to vector<8x1xf32>
    %c3 = arith.constant 3 : index
    %c0_10 = arith.constant 0 : index
    %c0_11 = arith.constant 0 : index
    %8 = vector.load %arg6[%c3, %c0_10, %c0_11] : memref<8x8x1xf32, #tpu.memory_space<vmem>>, vector<1x8x1xf32>
    %9 = vector.shape_cast %8 : vector<1x8x1xf32> to vector<8x1xf32>
    %c4 = arith.constant 4 : index
    %c0_12 = arith.constant 0 : index
    %c0_13 = arith.constant 0 : index
    %10 = vector.load %arg6[%c4, %c0_12, %c0_13] : memref<8x8x1xf32, #tpu.memory_space<vmem>>, vector<1x8x1xf32>
    %11 = vector.shape_cast %10 : vector<1x8x1xf32> to vector<8x1xf32>
    %c5 = arith.constant 5 : index
    %c0_14 = arith.constant 0 : index
    %c0_15 = arith.constant 0 : index
    %12 = vector.load %arg6[%c5, %c0_14, %c0_15] : memref<8x8x1xf32, #tpu.memory_space<vmem>>, vector<1x8x1xf32>
    %13 = vector.shape_cast %12 : vector<1x8x1xf32> to vector<8x1xf32>
    %c6 = arith.constant 6 : index
    %c0_16 = arith.constant 0 : index
    %c0_17 = arith.constant 0 : index
    %14 = vector.load %arg6[%c6, %c0_16, %c0_17] : memref<8x8x1xf32, #tpu.memory_space<vmem>>, vector<1x8x1xf32>
    %15 = vector.shape_cast %14 : vector<1x8x1xf32> to vector<8x1xf32>
    %c7 = arith.constant 7 : index
    %c0_18 = arith.constant 0 : index
    %c0_19 = arith.constant 0 : index
    %16 = vector.load %arg6[%c7, %c0_18, %c0_19] : memref<8x8x1xf32, #tpu.memory_space<vmem>>, vector<1x8x1xf32>
    %17 = vector.shape_cast %16 : vector<1x8x1xf32> to vector<8x1xf32>
    %18 = vector.extract_strided_slice %1 {offsets = [0, 0], sizes = [8, 1], strides = [1, 1]} : vector<8x3xf32> to vector<8x1xf32>
    %19 = vector.extract_strided_slice %0 {offsets = [0, 0], sizes = [1, 256], strides = [1, 1]} : vector<3x256xf32> to vector<1x256xf32>
    %20 = vector.broadcast %18 : vector<8x1xf32> to vector<8x256xf32>
    %21 = vector.broadcast %19 : vector<1x256xf32> to vector<8x256xf32>
    %22 = arith.mulf %20, %21 : vector<8x256xf32>
    %23 = vector.extract_strided_slice %1 {offsets = [0, 1], sizes = [8, 1], strides = [1, 1]} : vector<8x3xf32> to vector<8x1xf32>
    %24 = vector.extract_strided_slice %0 {offsets = [1, 0], sizes = [1, 256], strides = [1, 1]} : vector<3x256xf32> to vector<1x256xf32>
    %25 = vector.broadcast %23 : vector<8x1xf32> to vector<8x256xf32>
    %26 = vector.broadcast %24 : vector<1x256xf32> to vector<8x256xf32>
    %27 = arith.mulf %25, %26 : vector<8x256xf32>
    %28 = arith.addf %22, %27 : vector<8x256xf32>
    %29 = vector.extract_strided_slice %1 {offsets = [0, 2], sizes = [8, 1], strides = [1, 1]} : vector<8x3xf32> to vector<8x1xf32>
    %30 = vector.broadcast %29 : vector<8x1xf32> to vector<8x256xf32>
    %31 = arith.addf %28, %30 : vector<8x256xf32>
    %c0_20 = arith.constant 0 : index
    %c0_21 = arith.constant 0 : index
    %c0_22 = arith.constant 0 : index
    %32 = vector.load %arg3[%c0_20, %c0_21, %c0_22] : memref<2x8x8xf32, #tpu.memory_space<vmem>>, vector<1x8x8xf32>
    %33 = vector.shape_cast %32 : vector<1x8x8xf32> to vector<8x8xf32>
    %c1_23 = arith.constant 1 : index
    %c0_24 = arith.constant 0 : index
    %c0_25 = arith.constant 0 : index
    %34 = vector.load %arg3[%c1_23, %c0_24, %c0_25] : memref<2x8x8xf32, #tpu.memory_space<vmem>>, vector<1x8x8xf32>
    %35 = vector.shape_cast %34 : vector<1x8x8xf32> to vector<8x8xf32>
    %cst = arith.constant dense<0.000000e+00> : vector<256xf32>
    %36 = vector.multi_reduction <add>, %31, %cst [0] : vector<8x256xf32> to vector<256xf32>
    %37 = vector.shape_cast %36 : vector<256xf32> to vector<1x256xf32>
    %cst_26 = arith.constant 8.000000e+00 : f32
    %38 = vector.broadcast %cst_26 : f32 to vector<1x256xf32>
    %39 = arith.divf %37, %38 : vector<1x256xf32>
    %40 = vector.broadcast %39 : vector<1x256xf32> to vector<8x256xf32>
    %41 = arith.subf %31, %40 : vector<8x256xf32>
    %42 = arith.mulf %41, %41 : vector<8x256xf32>
    %cst_27 = arith.constant dense<0.000000e+00> : vector<256xf32>
    %43 = vector.multi_reduction <add>, %42, %cst_27 [0] : vector<8x256xf32> to vector<256xf32>
    %44 = vector.shape_cast %43 : vector<256xf32> to vector<1x256xf32>
    %cst_28 = arith.constant 8.000000e+00 : f32
    %45 = vector.broadcast %cst_28 : f32 to vector<1x256xf32>
    %46 = arith.divf %44, %45 : vector<1x256xf32>
    %cst_29 = arith.constant 9.99999974E-6 : f32
    %47 = vector.broadcast %cst_29 : f32 to vector<1x256xf32>
    %48 = arith.addf %46, %47 : vector<1x256xf32>
    %49 = math.rsqrt %48 : vector<1x256xf32>
    %50 = vector.broadcast %49 : vector<1x256xf32> to vector<8x256xf32>
    %51 = arith.mulf %41, %50 : vector<8x256xf32>
    %52 = vector.broadcast %3 : vector<8x1xf32> to vector<8x256xf32>
    %53 = arith.mulf %51, %52 : vector<8x256xf32>
    %54 = vector.broadcast %5 : vector<8x1xf32> to vector<8x256xf32>
    %55 = arith.addf %53, %54 : vector<8x256xf32>
    %cst_30 = arith.constant 0.000000e+00 : f32
    %56 = vector.broadcast %cst_30 : f32 to vector<8x256xf32>
    %57 = arith.maximumf %55, %56 : vector<8x256xf32>
    %cst_31 = arith.constant dense<0.000000e+00> : vector<8x256xf32>
    %58 = tpu.matmul %33, %57, %cst_31 {dimension_numbers = #tpu.dot_dimension_numbers<[1], [0], [0], [1], [0, 0, 1, 1], [], []>, precision = #tpu.contract_precision<fp32>} : vector<8x8xf32>, vector<8x256xf32>, vector<8x256xf32> -> vector<8x256xf32>
    %59 = vector.broadcast %7 : vector<8x1xf32> to vector<8x256xf32>
    %60 = arith.addf %58, %59 : vector<8x256xf32>
    %61 = arith.addf %31, %60 : vector<8x256xf32>
    %cst_32 = arith.constant dense<0.000000e+00> : vector<256xf32>
    %62 = vector.multi_reduction <add>, %61, %cst_32 [0] : vector<8x256xf32> to vector<256xf32>
    %63 = vector.shape_cast %62 : vector<256xf32> to vector<1x256xf32>
    %cst_33 = arith.constant 8.000000e+00 : f32
    %64 = vector.broadcast %cst_33 : f32 to vector<1x256xf32>
    %65 = arith.divf %63, %64 : vector<1x256xf32>
    %66 = vector.broadcast %65 : vector<1x256xf32> to vector<8x256xf32>
    %67 = arith.subf %61, %66 : vector<8x256xf32>
    %68 = arith.mulf %67, %67 : vector<8x256xf32>
    %cst_34 = arith.constant dense<0.000000e+00> : vector<256xf32>
    %69 = vector.multi_reduction <add>, %68, %cst_34 [0] : vector<8x256xf32> to vector<256xf32>
    %70 = vector.shape_cast %69 : vector<256xf32> to vector<1x256xf32>
    %cst_35 = arith.constant 8.000000e+00 : f32
    %71 = vector.broadcast %cst_35 : f32 to vector<1x256xf32>
    %72 = arith.divf %70, %71 : vector<1x256xf32>
    %cst_36 = arith.constant 9.99999974E-6 : f32
    %73 = vector.broadcast %cst_36 : f32 to vector<1x256xf32>
    %74 = arith.addf %72, %73 : vector<1x256xf32>
    %75 = math.rsqrt %74 : vector<1x256xf32>
    %76 = vector.broadcast %75 : vector<1x256xf32> to vector<8x256xf32>
    %77 = arith.mulf %67, %76 : vector<8x256xf32>
    %78 = vector.broadcast %9 : vector<8x1xf32> to vector<8x256xf32>
    %79 = arith.mulf %77, %78 : vector<8x256xf32>
    %80 = vector.broadcast %11 : vector<8x1xf32> to vector<8x256xf32>
    %81 = arith.addf %79, %80 : vector<8x256xf32>
    %cst_37 = arith.constant 0.000000e+00 : f32
    %82 = vector.broadcast %cst_37 : f32 to vector<8x256xf32>
    %83 = arith.maximumf %81, %82 : vector<8x256xf32>
    %cst_38 = arith.constant dense<0.000000e+00> : vector<8x256xf32>
    %84 = tpu.matmul %35, %83, %cst_38 {dimension_numbers = #tpu.dot_dimension_numbers<[1], [0], [0], [1], [0, 0, 1, 1], [], []>, precision = #tpu.contract_precision<fp32>} : vector<8x8xf32>, vector<8x256xf32>, vector<8x256xf32> -> vector<8x256xf32>
    %85 = vector.broadcast %13 : vector<8x1xf32> to vector<8x256xf32>
    %86 = arith.addf %84, %85 : vector<8x256xf32>
    %87 = arith.addf %61, %86 : vector<8x256xf32>
    %c0_39 = arith.constant 0 : index
    %c0_40 = arith.constant 0 : index
    %88 = vector.load %arg4[%c0_39, %c0_40] : memref<8x8xf32, #tpu.memory_space<vmem>>, vector<8x8xf32>
    %c0_41 = arith.constant 0 : index
    %c0_42 = arith.constant 0 : index
    %89 = vector.load %arg5[%c0_41, %c0_42] : memref<8x1xf32, #tpu.memory_space<vmem>>, vector<8x1xf32>
    %cst_43 = arith.constant dense<0.000000e+00> : vector<256xf32>
    %90 = vector.multi_reduction <add>, %87, %cst_43 [0] : vector<8x256xf32> to vector<256xf32>
    %91 = vector.shape_cast %90 : vector<256xf32> to vector<1x256xf32>
    %cst_44 = arith.constant 8.000000e+00 : f32
    %92 = vector.broadcast %cst_44 : f32 to vector<1x256xf32>
    %93 = arith.divf %91, %92 : vector<1x256xf32>
    %94 = vector.broadcast %93 : vector<1x256xf32> to vector<8x256xf32>
    %95 = arith.subf %87, %94 : vector<8x256xf32>
    %96 = arith.mulf %95, %95 : vector<8x256xf32>
    %cst_45 = arith.constant dense<0.000000e+00> : vector<256xf32>
    %97 = vector.multi_reduction <add>, %96, %cst_45 [0] : vector<8x256xf32> to vector<256xf32>
    %98 = vector.shape_cast %97 : vector<256xf32> to vector<1x256xf32>
    %cst_46 = arith.constant 8.000000e+00 : f32
    %99 = vector.broadcast %cst_46 : f32 to vector<1x256xf32>
    %100 = arith.divf %98, %99 : vector<1x256xf32>
    %cst_47 = arith.constant 9.99999974E-6 : f32
    %101 = vector.broadcast %cst_47 : f32 to vector<1x256xf32>
    %102 = arith.addf %100, %101 : vector<1x256xf32>
    %103 = math.rsqrt %102 : vector<1x256xf32>
    %104 = vector.broadcast %103 : vector<1x256xf32> to vector<8x256xf32>
    %105 = arith.mulf %95, %104 : vector<8x256xf32>
    %106 = vector.broadcast %15 : vector<8x1xf32> to vector<8x256xf32>
    %107 = arith.mulf %105, %106 : vector<8x256xf32>
    %108 = vector.broadcast %17 : vector<8x1xf32> to vector<8x256xf32>
    %109 = arith.addf %107, %108 : vector<8x256xf32>
    %cst_48 = arith.constant 0.000000e+00 : f32
    %110 = vector.broadcast %cst_48 : f32 to vector<8x256xf32>
    %111 = arith.maximumf %109, %110 : vector<8x256xf32>
    %cst_49 = arith.constant dense<0.000000e+00> : vector<8x256xf32>
    %112 = tpu.matmul %88, %111, %cst_49 {dimension_numbers = #tpu.dot_dimension_numbers<[1], [0], [0], [1], [0, 0, 1, 1], [], []>, precision = #tpu.contract_precision<fp32>} : vector<8x8xf32>, vector<8x256xf32>, vector<8x256xf32> -> vector<8x256xf32>
    %113 = vector.broadcast %89 : vector<8x1xf32> to vector<8x256xf32>
    %114 = arith.addf %112, %113 : vector<8x256xf32>
    %c0_50 = arith.constant 0 : index
    %c0_51 = arith.constant 0 : index
    %115 = vector.load %arg7[%c0_50, %c0_51] : memref<8x256xf32, #tpu.memory_space<vmem>>, vector<8x256xf32>
    tpu.vector_store %arg7[%c0_50, %c0_51], %114 {strides = array<i32>} : memref<8x256xf32, #tpu.memory_space<vmem>>, vector<8x256xf32>,
    return
  }
  func.func @transform_0(%arg0: i32) -> (i32, i32) {
    %c0_i32 = arith.constant 0 : i32
    %c0_i32_0 = arith.constant 0 : i32
    return %c0_i32, %arg0 : i32, i32
  }
  func.func @transform_1(%arg0: i32) -> (i32, i32) {
    %c0_i32 = arith.constant 0 : i32
    %c0_i32_0 = arith.constant 0 : i32
    %c0_i32_1 = arith.constant 0 : i32
    return %c0_i32, %c0_i32_0 : i32, i32
  }
  func.func @transform_2(%arg0: i32) -> (i32, i32, i32) {
    %c0_i32 = arith.constant 0 : i32
    %c0_i32_0 = arith.constant 0 : i32
    %c0_i32_1 = arith.constant 0 : i32
    %c0_i32_2 = arith.constant 0 : i32
    return %c0_i32, %c0_i32_0, %c0_i32_1 : i32, i32, i32
  }
  func.func @transform_3(%arg0: i32) -> (i32, i32) {
    %c0_i32 = arith.constant 0 : i32
    %c0_i32_0 = arith.constant 0 : i32
    %c0_i32_1 = arith.constant 0 : i32
    return %c0_i32, %c0_i32_0 : i32, i32
  }
  func.func @transform_4(%arg0: i32) -> (i32, i32) {
    %c0_i32 = arith.constant 0 : i32
    %c0_i32_0 = arith.constant 0 : i32
    %c0_i32_1 = arith.constant 0 : i32
    return %c0_i32, %c0_i32_0 : i32, i32
  }
  func.func @transform_5(%arg0: i32) -> (i32, i32, i32) {
    %c0_i32 = arith.constant 0 : i32
    %c0_i32_0 = arith.constant 0 : i32
    %c0_i32_1 = arith.constant 0 : i32
    %c0_i32_2 = arith.constant 0 : i32
    return %c0_i32, %c0_i32_0, %c0_i32_1 : i32, i32, i32
  }
  func.func @transform_6(%arg0: i32) -> (i32, i32) {
    %c0_i32 = arith.constant 0 : i32
    %c0_i32_0 = arith.constant 0 : i32
    return %c0_i32, %arg0 : i32, i32
  }
}

</mosaic_0001>

<bundles_post_ra>
// kernel: tpu_custom_call.1
= control target key start
LH: loop header
LB: loop body
LE: loop exit
PB: predicated region body
PF: predicated region fallthrough
CT: control target
= control target key end

     0   :  { %v1285_v1 = vmov 0   ;;  %v1286_v2 = vmov 2   ;;  %s1429_s0 = inlined_call_operand.vmem [shape: f32[3,256], index: 0, kind: input, shape index: {}]   ;;  %s1430_s1 = inlined_call_operand.vmem [shape: f32[8,3], index: 1, kind: input, shape index: {}]   ;;  %s1431_s2 = inlined_call_operand.vmem [shape: f32[2,8,8], index: 2, kind: input, shape index: {}]   ;;  %s1432_s3 = inlined_call_operand.vmem [shape: f32[8,8], index: 3, kind: input, shape index: {}]   ;;  %s1433_s4 = inlined_call_operand.vmem [shape: f32[8,1], index: 4, kind: input, shape index: {}]   ;;  %s1434_s5 = inlined_call_operand.vmem [shape: f32[8,8,1], index: 5, kind: input, shape index: {}]   ;;  %s1435_s6 = inlined_call_operand.hbm [shape: f32[8,256], index: 6, kind: output, shape index: {}]  }
   0x1   :  { %v25_v0 = vld [vmem:[%s1430_s1] sm:$0xff]  ;;  %1239 = vset.pattern.permute.xlu0 %v1285_v1  ;;  %1241 = vset.pattern.permute.xlu1 %v1286_v2 }
   0x2   :  { %11 = vsyncpa [#allocation3], 0  ;;  %43 = vperm.xlu0 %1239, %v25_v0   ;;  %70 = vperm.xlu1 %1241, %v25_v0   ;;  %v1226_v3 = vld [vmem:[%s1434_s5 + $0x8] sm:$0xff]  ;;  %v26_v4 = vld [vmem:[%s1434_s5] sm:$0xff]  ;;  %v1287_v6 = vmov 1   ;;  %v1288_v14 = vmov 8.0  }
   0x3   :  { %1243 = vset.pattern.permute.xlu2 %v1285_v1  ;;  %v1227_v5 = vld [vmem:[%s1434_s5 + $0x10] sm:$0xff]  ;;  %v1228_v7 = vld [vmem:[%s1434_s5 + $0x18] sm:$0xff]  ;;  %v1229_v8 = vld [vmem:[%s1434_s5 + $0x20] sm:$0xff]  ;;  %1245 = vrcp.f32 %v1288_v14  ;;  %vm162_vm1 = vcmask 64512   ;;  %s1217_s23 = sshll.u32 %s1435_s6, 4  ;;  %s1218_s23 = int_to_ptr.hbm [resolvable:$true] %s1217_s23 }
   0x4   :  { %150 = vperm.xlu2 %1243, %v1226_v3   ;;  %v1231_v9 = vld [vmem:[%s1434_s5 + $0x30] sm:$0xff]  ;;  %v1232_v10 = vld [vmem:[%s1434_s5 + $0x38] sm:$0xff]  ;;  %v835_v11 = vld [vmem:[%s1433_s4] sm:$0xff] }
   0x5   :  { %v24_v12 = vld [vmem:[%s1429_s0] sm:$0x77] }
   0x6   :  { %v47_v15 = vperm.slane %v24_v12, 0  ;;  %v48_v16 = vperm.slane %v24_v12, 4  ;;  %v59_v17 = vperm.slane %v24_v12, 1  ;;  %v60_v18 = vperm.slane %v24_v12, 5 }
   0x8   :  { %v51_v20 = vperm.slane %v47_v15, 0  ;;  %v52_v21 = vperm.slane %v48_v16, 0  ;;  %v63_v22 = vperm.slane %v59_v17, 1  ;;  %v64_v23 = vperm.slane %v60_v18, 1 }
   0x9   :  { %v1246_v19 = vpop.eup %1245 }
   0xa   :  { %1240 = vset.pattern.permute.xlu0 %v1287_v6  ;;  %1242 = vset.pattern.permute.xlu1 %v1285_v1  ;;  %v91_v25 = vmul.f32 8.0, %v1246_v19  ;;  %vm95_vm0 = vweird.f32 %v1246_v19 }
   0xb   :  { %56 = vperm.xlu0 %1240, %v25_v0   ;;  %143 = vperm.xlu1 %1242, %v26_v4  }
   0xc   :  { %159 = vperm.xlu2 %1243, %v1227_v5   ;;  %v92_v33 = vsub.f32 1.0, %v91_v25 }
   0xe   :  { %v93_v38 = vmul.f32 %v1246_v19, %v92_v33 }
  0x10   :  { %v94_v43 = vadd.f32 %v1246_v19, %v93_v38 }
  0x12   :  { %v1363_v48 = vsel %vm95_vm0, %v1246_v19, %v94_v43 }
  0x13   :  { %518 = vperm.xlu1 %1242, %v1228_v7   ;;  %1244 = vset.pattern.permute.xlu0 %v1285_v1 }
  0x14   :  { %525 = vperm.xlu2 %1243, %v1229_v8  }
  0x1b   :  { %894 = vperm.xlu1 %1242, %v1231_v9   ;;  %v75_v9 = vld [vmem:[%s1431_s2] sm:$0xff] }
  0x1c   :  { %901 = vperm.xlu2 %1243, %v1232_v10  }
  0x23   :  { %910 = vperm.xlu1 %1242, %v835_v11   ;;  %v164_v11 = vsel %vm162_vm1, %v75_v9, 0 }
  0x24   :  { %v183_v16 = vand.u32 4294901760, %v164_v11 }
  0x5e   :  { %v151_v33 = vpop.permute.xlu2 %150 }
  0x74   :  { %v44_v13 = vpop.permute.xlu0 %43  ;;  %v71_v30 = vpop.permute.xlu1 %70 }
  0x75   :  { %v53_v26 = vmul.f32 %v51_v20, %v44_v13  ;;  %v54_v27 = vmul.f32 %v52_v21, %v44_v13  ;;  %v184_v21 = vsub.f32 %v164_v11, %v183_v16 }
  0x7d   :  { %v57_v24 = vpop.permute.xlu0 %56 }
  0x7e   :  { %v65_v28 = vmul.f32 %v63_v22, %v57_v24  ;;  %v66_v29 = vmul.f32 %v64_v23, %v57_v24 }
  0x80   :  { %v67_v31 = vadd.f32 %v65_v28, %v53_v26  ;;  %v68_v32 = vadd.f32 %v66_v29, %v54_v27  ;;  %v185_v26 = vand.u32 4294901760, %v184_v21  ;;  %v144_v29 = vpop.permute.xlu1 %143 }
  0x82   :  { %v1355_v34 = vadd.f32 %v71_v30, %v67_v31  ;;  %v1357_v35 = vadd.f32 %v71_v30, %v68_v32 }
  0x84   :  { %v78_v36 = vrot.slane %v1355_v34, 4  ;;  %v84_v37 = vrot.slane %v1357_v35, 4 }
  0x86   :  { %v79_v39 = vadd.f32 %v78_v36, %v1355_v34  ;;  %v85_v40 = vadd.f32 %v84_v37, %v1357_v35  ;;  %v186_v36 = vsub.f32 %v184_v21, %v185_v26 }
  0x88   :  { %v80_v41 = vrot.slane %v79_v39, 2  ;;  %v86_v42 = vrot.slane %v85_v40, 2 }
  0x8a   :  { %v81_v44 = vadd.f32 %v80_v41, %v79_v39  ;;  %v87_v45 = vadd.f32 %v86_v42, %v85_v40  ;;  %v187_v41 = vand.u32 4294901760, %v186_v36 }
  0x8c   :  { %v82_v46 = vrot.slane %v81_v44, 1  ;;  %v88_v47 = vrot.slane %v87_v45, 1 }
  0x8e   :  { %v83_v49 = vadd.f32 %v82_v46, %v81_v44  ;;  %v89_v50 = vadd.f32 %v88_v47, %v87_v45 }
  0x90   :  { %v97_v51 = vmul.f32 %v1363_v48, %v83_v49  ;;  %v98_v52 = vmul.f32 %v1363_v48, %v89_v50 }
  0x92   :  { %v99_v53 = vsub.f32 %v1355_v34, %v97_v51  ;;  %v100_v54 = vsub.f32 %v1357_v35, %v98_v52 }
  0x94   :  { %v101_v55 = vmul.f32 %v99_v53, %v99_v53  ;;  %v102_v56 = vmul.f32 %v100_v54, %v100_v54 }
  0x96   :  { %v103_v57 = vrot.slane %v101_v55, 4  ;;  %v109_v58 = vrot.slane %v102_v56, 4 }
  0x98   :  { %v104_v59 = vadd.f32 %v103_v57, %v101_v55  ;;  %v110_v60 = vadd.f32 %v109_v58, %v102_v56 }
  0x9a   :  { %v105_v61 = vrot.slane %v104_v59, 2  ;;  %v111_v62 = vrot.slane %v110_v60, 2 }
  0x9c   :  { %v106_v63 = vadd.f32 %v105_v61, %v104_v59  ;;  %v112_v0 = vadd.f32 %v111_v62, %v110_v60 }
  0x9e   :  { %v107_v1 = vrot.slane %v106_v63, 1  ;;  %v113_v2 = vrot.slane %v112_v0, 1 }
  0xa0   :  { %v108_v3 = vadd.f32 %v107_v1, %v106_v63  ;;  %v114_v4 = vadd.f32 %v113_v2, %v112_v0 }
  0xa2   :  { %v115_v5 = vmul.f32 %v108_v3, %v1363_v48  ;;  %v116_v6 = vmul.f32 %v114_v4, %v1363_v48 }
  0xa4   :  { %v117_v7 = vadd.f32 1e-05, %v115_v5  ;;  %v118_v8 = vadd.f32 1e-05, %v116_v6 }
  0xa6   :  { %1247 = vrsqrt.f32 %v117_v7  ;;  %vm125_vm4 = vweird.f32 %v117_v7  ;;  %vm135_vm6 = vweird.f32 %v118_v8 }
  0xa7   :  { %1249 = vrsqrt.f32 %v118_v8 }
  0xac   :  { %v1248_v10 = vpop.eup %1247 }
  0xad   :  { %v1250_v12 = vpop.eup %1249  ;;  %v120_v13 = vmul.f32 %v1248_v10, %v117_v7  ;;  %vm126_vm2 = vweird.f32 %v1248_v10 }
  0xae   :  { %v130_v14 = vmul.f32 %v1250_v12, %v118_v8  ;;  %vm136_vm3 = vweird.f32 %v1250_v12  ;;  %vm127_vm5 = vmor %vm125_vm4, %vm126_vm2 }
  0xaf   :  { %v121_v15 = vmul.f32 %v1248_v10, %v120_v13  ;;  %vm137_vm7 = vmor %vm135_vm6, %vm136_vm3 }
  0xb0   :  { %v131_v17 = vmul.f32 %v1250_v12, %v130_v14 }
  0xb1   :  { %v122_v18 = vmul.f32 0.5, %v121_v15 }
  0xb2   :  { %v132_v19 = vmul.f32 0.5, %v131_v17 }
  0xb3   :  { %v123_v20 = vsub.f32 1.5, %v122_v18 }
  0xb4   :  { %v133_v22 = vsub.f32 1.5, %v132_v19 }
  0xb5   :  { %v124_v23 = vmul.f32 %v1248_v10, %v123_v20 }
  0xb6   :  { %v134_v24 = vmul.f32 %v1250_v12, %v133_v22 }
  0xb7   :  { %v128_v25 = vsel %vm127_vm5, %v1248_v10, %v124_v23 }
  0xb8   :  { %v138_v27 = vsel %vm137_vm7, %v1250_v12, %v134_v24  ;;  %v139_v28 = vmul.f32 %v128_v25, %v99_v53 }
  0xb9   :  { %v140_v30 = vmul.f32 %v138_v27, %v100_v54  ;;  %v160_v54 = vpop.permute.xlu2 %159 }
  0xba   :  { %v146_v31 = vmul.f32 %v144_v29, %v139_v28 }
  0xbb   :  { %v147_v32 = vmul.f32 %v144_v29, %v140_v30 }
  0xbc   :  { %v153_v37 = vadd.f32 %v151_v33, %v146_v31 }
  0xbd   :  { %v154_v38 = vadd.f32 %v151_v33, %v147_v32 }
  0xbe   :  { %v155_v39 = vmax.f32 %v153_v37, 0.0 }
  0xbf   :  { %v156_v40 = vmax.f32 %v154_v38, 0.0 }
  0xc0   :  { %v181_v42 = vand.u32 4294901760, %v155_v39 }
  0xc1   :  { %v327_v43 = vand.u32 4294901760, %v156_v40 }
  0xc2   :  { %182 = vmatpush.msra.mxu0 %v181_v42  ;;  %258 = vmatpush.msra.mxu3 %v181_v42  ;;  %v208_v44 = vsub.f32 %v155_v39, %v181_v42 }
  0xc3   :  { %v354_v45 = vsub.f32 %v156_v40, %v327_v43  ;;  %188 = vmatmul.f32.vlgmr.msra.gmra.mxu0 %v187_v41  ;;  %262 = vmatmul.f32.vlgmr.msra.gmra.mxu3 %v185_v26 }
  0xc4   :  { %235 = vmatpush.msra.mxu2 %v208_v44  ;;  %v209_v46 = vand.u32 4294901760, %v208_v44 }
  0xc5   :  { %238 = vmatmul.f32.vlgmr.msra.gmra.mxu2 %v184_v21  ;;  %v355_v47 = vand.u32 4294901760, %v354_v45 }
  0xc6   :  { %328 = vmatpush.msrb.mxu2 %v327_v43  ;;  %284 = vmatpush.msrb.mxu0 %v209_v46  ;;  %v210_v49 = vsub.f32 %v208_v44, %v209_v46  ;;  %v1233_v46 = vld [vmem:[%s1431_s2 + $0x8] sm:$0xff] }
  0xc7   :  { %v356_v50 = vsub.f32 %v354_v45, %v355_v47 }
  0xc8   :  { %430 = vmatpush.msra.mxu2 %v355_v47  ;;  %381 = vmatpush.msra.mxu0 %v354_v45  ;;  %v211_v51 = vand.u32 4294901760, %v210_v49 }
  0xc9   :  { %v357_v52 = vand.u32 4294901760, %v356_v50 }
  0xca   :  { %212 = vmatpush.msra.mxu1 %v211_v51  ;;  %v538_v51 = vsel %vm162_vm1, %v1233_v46, 0 }
  0xcb   :  { %358 = vmatpush.msrb.mxu3 %v357_v52  ;;  %214 = vmatmul.f32.vlgmr.msra.gmra.mxu1 %v183_v16 }
  0xcc   :  { %306 = vmatpush.msrb.mxu1 %v181_v42  ;;  %286 = vmatmul.f32.vlgmr.msrb.gmra.mxu0 %v183_v16 }
  0xcd   :  { %452 = vmatpush.msra.mxu3 %v327_v43  ;;  %334 = vmatmul.f32.vlgmr.msrb.gmra.mxu2 %v187_v41 }
  0xce   :  { %404 = vmatpush.msra.mxu1 %v327_v43  ;;  %360 = vmatmul.f32.vlgmr.msrb.gmra.mxu3 %v183_v16 }
  0xd3   :  { %308 = vmatmul.f32.vlgmr.msrb.gmra.mxu1 %v183_v16 }
  0xd4   :  { %384 = vmatmul.f32.vlgmr.msra.gmra.mxu0 %v184_v21 }
  0xd5   :  { %432 = vmatmul.f32.vlgmr.msra.gmra.mxu2 %v183_v16 }
  0xd6   :  { %454 = vmatmul.f32.vlgmr.msra.gmra.mxu3 %v183_v16 }
  0xdb   :  { %408 = vmatmul.f32.vlgmr.msra.gmra.mxu1 %v185_v26 }
 0x140   :  { %v189_v53 = vpop.f32.mrf.mxu0 }
 0x141   :  { %v190_v55 = vadd.f32 %v189_v53, %v160_v54 }
 0x146   :  { %v263_v56 = vpop.f32.mrf.mxu3 }
 0x148   :  { %v215_v57 = vpop.f32.mrf.mxu1  ;;  %v239_v58 = vpop.f32.mrf.mxu2 }
 0x149   :  { %v216_v59 = vadd.f32 %v215_v57, %v190_v55  ;;  %v287_v61 = vpop.f32.mrf.mxu0  ;;  %v1395_v55 = vand.u32 4294901760, %v538_v51 }
 0x14b   :  { %v240_v60 = vadd.f32 %v239_v58, %v216_v59  ;;  %v558_v59 = vsub.f32 %v538_v51, %v1395_v55 }
 0x14d   :  { %v264_v62 = vadd.f32 %v263_v56, %v240_v60  ;;  %v1230_v60 = vld [vmem:[%s1434_s5 + $0x28] sm:$0xff] }
 0x14e   :  { %534 = vperm.xlu0 %1244, %v1230_v60  }
 0x14f   :  { %v288_v63 = vadd.f32 %v287_v61, %v264_v62 }
 0x150   :  { %v309_v0 = vpop.f32.mrf.mxu1  ;;  %v335_v1 = vpop.f32.mrf.mxu2 }
 0x151   :  { %v310_v2 = vadd.f32 %v309_v0, %v288_v63  ;;  %v336_v3 = vadd.f32 %v335_v1, %v160_v54  ;;  %v361_v4 = vpop.f32.mrf.mxu3  ;;  %v385_v7 = vpop.f32.mrf.mxu0  ;;  %v559_v63 = vand.u32 4294901760, %v558_v59 }
 0x153   :  { %v1376_v5 = vadd.f32 %v310_v2, %v1355_v34  ;;  %v362_v6 = vadd.f32 %v361_v4, %v336_v3  ;;  %v519_v2 = vpop.permute.xlu1 %518 }
 0x155   :  { %v460_v8 = vrot.slane %v1376_v5, 4  ;;  %v386_v10 = vadd.f32 %v385_v7, %v362_v6  ;;  %v526_v6 = vpop.permute.xlu2 %525 }
 0x157   :  { %v461_v9 = vadd.f32 %v460_v8, %v1376_v5  ;;  %v560_v8 = vsub.f32 %v558_v59, %v559_v63 }
 0x158   :  { %v409_v11 = vpop.f32.mrf.mxu1  ;;  %v433_v12 = vpop.f32.mrf.mxu2 }
 0x159   :  { %v462_v13 = vrot.slane %v461_v9, 2  ;;  %v410_v14 = vadd.f32 %v409_v11, %v386_v10  ;;  %v455_v15 = vpop.f32.mrf.mxu3 }
 0x15b   :  { %v463_v16 = vadd.f32 %v462_v13, %v461_v9  ;;  %v434_v17 = vadd.f32 %v433_v12, %v410_v14  ;;  %v561_v13 = vand.u32 4294901760, %v560_v8 }
 0x15d   :  { %v464_v18 = vrot.slane %v463_v16, 1  ;;  %v456_v19 = vadd.f32 %v455_v15, %v434_v17 }
 0x15f   :  { %v465_v20 = vadd.f32 %v464_v18, %v463_v16  ;;  %v1381_v34 = vadd.f32 %v456_v19, %v1357_v35 }
 0x161   :  { %v472_v21 = vmul.f32 %v465_v20, %v1363_v48  ;;  %v466_v22 = vrot.slane %v1381_v34, 4 }
 0x163   :  { %v474_v23 = vsub.f32 %v1376_v5, %v472_v21  ;;  %v467_v24 = vadd.f32 %v466_v22, %v1381_v34 }
 0x165   :  { %v476_v25 = vmul.f32 %v474_v23, %v474_v23  ;;  %v468_v26 = vrot.slane %v467_v24, 2 }
 0x167   :  { %v478_v27 = vrot.slane %v476_v25, 4  ;;  %v469_v28 = vadd.f32 %v468_v26, %v467_v24 }
 0x169   :  { %v479_v29 = vadd.f32 %v478_v27, %v476_v25  ;;  %v470_v30 = vrot.slane %v469_v28, 1 }
 0x16b   :  { %v480_v31 = vrot.slane %v479_v29, 2  ;;  %v471_v32 = vadd.f32 %v470_v30, %v469_v28 }
 0x16d   :  { %v481_v33 = vadd.f32 %v480_v31, %v479_v29  ;;  %v473_v35 = vmul.f32 %v471_v32, %v1363_v48 }
 0x16f   :  { %v482_v36 = vrot.slane %v481_v33, 1  ;;  %v475_v37 = vsub.f32 %v1381_v34, %v473_v35 }
 0x171   :  { %v483_v38 = vadd.f32 %v482_v36, %v481_v33  ;;  %v477_v39 = vmul.f32 %v475_v37, %v475_v37 }
 0x173   :  { %v490_v40 = vmul.f32 %v483_v38, %v1363_v48  ;;  %v484_v41 = vrot.slane %v477_v39, 4 }
 0x175   :  { %v492_v42 = vadd.f32 1e-05, %v490_v40  ;;  %v485_v43 = vadd.f32 %v484_v41, %v477_v39 }
 0x177   :  { %1251 = vrsqrt.f32 %v492_v42  ;;  %v486_v44 = vrot.slane %v485_v43, 2  ;;  %vm500_vm9 = vweird.f32 %v492_v42 }
 0x179   :  { %v487_v45 = vadd.f32 %v486_v44, %v485_v43 }
 0x17b   :  { %v488_v47 = vrot.slane %v487_v45, 1 }
 0x17d   :  { %v1252_v49 = vpop.eup %1251  ;;  %v489_v50 = vadd.f32 %v488_v47, %v487_v45 }
 0x17e   :  { %v495_v52 = vmul.f32 %v1252_v49, %v492_v42  ;;  %vm501_vm8 = vweird.f32 %v1252_v49 }
 0x17f   :  { %v491_v53 = vmul.f32 %v489_v50, %v1363_v48  ;;  %vm502_vm10 = vmor %vm500_vm9, %vm501_vm8 }
 0x180   :  { %v496_v54 = vmul.f32 %v1252_v49, %v495_v52 }
 0x181   :  { %v493_v56 = vadd.f32 1e-05, %v491_v53 }
 0x182   :  { %v497_v57 = vmul.f32 0.5, %v496_v54 }
 0x183   :  { %1253 = vrsqrt.f32 %v493_v56  ;;  %vm510_vm12 = vweird.f32 %v493_v56 }
 0x184   :  { %v498_v58 = vsub.f32 1.5, %v497_v57 }
 0x186   :  { %v499_v61 = vmul.f32 %v1252_v49, %v498_v58 }
 0x188   :  { %v503_v62 = vsel %vm502_vm10, %v1252_v49, %v499_v61 }
 0x189   :  { %v1254_v0 = vpop.eup %1253  ;;  %v514_v1 = vmul.f32 %v503_v62, %v474_v23 }
 0x18a   :  { %v505_v3 = vmul.f32 %v1254_v0, %v493_v56  ;;  %vm511_vm11 = vweird.f32 %v1254_v0 }
 0x18b   :  { %v521_v4 = vmul.f32 %v519_v2, %v514_v1  ;;  %vm512_vm13 = vmor %vm510_vm12, %vm511_vm11 }
 0x18c   :  { %v506_v7 = vmul.f32 %v1254_v0, %v505_v3 }
 0x18d   :  { %v528_v9 = vadd.f32 %v526_v6, %v521_v4 }
 0x18e   :  { %v507_v10 = vmul.f32 0.5, %v506_v7 }
 0x18f   :  { %v530_v11 = vmax.f32 %v528_v9, 0.0 }
 0x190   :  { %v508_v12 = vsub.f32 1.5, %v507_v10 }
 0x191   :  { %v555_v14 = vand.u32 4294901760, %v530_v11 }
 0x192   :  { %v509_v15 = vmul.f32 %v1254_v0, %v508_v12 }
 0x193   :  { %556 = vmatpush.msrb.mxu0 %v555_v14  ;;  %632 = vmatpush.msrb.mxu3 %v555_v14  ;;  %v582_v16 = vsub.f32 %v530_v11, %v555_v14 }
 0x194   :  { %v513_v17 = vsel %vm512_vm13, %v1254_v0, %v509_v15  ;;  %562 = vmatmul.f32.vlgmr.msrb.gmra.mxu0 %v561_v13  ;;  %636 = vmatmul.f32.vlgmr.msrb.gmra.mxu3 %v559_v63 }
 0x195   :  { %v515_v18 = vmul.f32 %v513_v17, %v475_v37  ;;  %609 = vmatpush.msrb.mxu2 %v582_v16  ;;  %v583_v19 = vand.u32 4294901760, %v582_v16 }
 0x196   :  { %612 = vmatmul.f32.vlgmr.msrb.gmra.mxu2 %v558_v59 }
 0x197   :  { %658 = vmatpush.msra.mxu0 %v583_v19  ;;  %v584_v20 = vsub.f32 %v582_v16, %v583_v19  ;;  %v522_v21 = vmul.f32 %v519_v2, %v515_v18 }
 0x199   :  { %v585_v22 = vand.u32 4294901760, %v584_v20  ;;  %v529_v23 = vadd.f32 %v526_v6, %v522_v21  ;;  %v834_v21 = vld [vmem:[%s1432_s3] sm:$0xff]  ;;  %s1289_s3 = smov [#allocation2]  }
 0x19a   :  { %s1215_s20 = sshll.u32 %s1289_s3, 4  ;;  %s1216_s20 = int_to_ptr.vmem [resolvable:$true] %s1215_s20 }
 0x19b   :  { %586 = vmatpush.msrb.mxu1 %v585_v22  ;;  %v531_v24 = vmax.f32 %v529_v23, 0.0 }
 0x19c   :  { %588 = vmatmul.f32.vlgmr.msrb.gmra.mxu1 %v1395_v55  ;;  %660 = vmatmul.f32.vlgmr.msra.gmra.mxu0 %v1395_v55 }
 0x19d   :  { %680 = vmatpush.msra.mxu1 %v555_v14  ;;  %v701_v25 = vand.u32 4294901760, %v531_v24 }
 0x19f   :  { %702 = vmatpush.msra.mxu2 %v701_v25  ;;  %778 = vmatpush.msrb.mxu1 %v701_v25  ;;  %v728_v26 = vsub.f32 %v531_v24, %v701_v25  ;;  %v914_v24 = vsel %vm162_vm1, %v834_v21, 0 }
 0x1a0   :  { %708 = vmatmul.f32.vlgmr.msra.gmra.mxu2 %v561_v13 }
 0x1a1   :  { %755 = vmatpush.msrb.mxu0 %v728_v26  ;;  %v729_v27 = vand.u32 4294901760, %v728_v26 }
 0x1a3   :  { %804 = vmatpush.msrb.mxu2 %v729_v27  ;;  %v730_v28 = vsub.f32 %v728_v26, %v729_v27 }
 0x1a4   :  { %682 = vmatmul.f32.vlgmr.msra.gmra.mxu1 %v1395_v55  ;;  %758 = vmatmul.f32.vlgmr.msrb.gmra.mxu0 %v558_v59 }
 0x1a5   :  { %v731_v29 = vand.u32 4294901760, %v730_v28  ;;  %v1416_v28 = vand.u32 4294901760, %v914_v24 }
 0x1a7   :  { %732 = vmatpush.msra.mxu3 %v731_v29 }
 0x1a8   :  { %734 = vmatmul.f32.vlgmr.msra.gmra.mxu3 %v1395_v55  ;;  %806 = vmatmul.f32.vlgmr.msrb.gmra.mxu2 %v1395_v55 }
 0x1a9   :  { %826 = vmatpush.msrb.mxu3 %v701_v25 }
 0x1ac   :  { %782 = vmatmul.f32.vlgmr.msrb.gmra.mxu1 %v559_v63 }
 0x1b0   :  { %828 = vmatmul.f32.vlgmr.msrb.gmra.mxu3 %v1395_v55 }
 0x1c0   :  { %v535_v30 = vpop.permute.xlu0 %534 }
 0x211   :  { %v563_v31 = vpop.f32.mrf.mxu0 }
 0x212   :  { %v564_v32 = vadd.f32 %v563_v31, %v535_v30 }
 0x217   :  { %v637_v37 = vpop.f32.mrf.mxu3 }
 0x219   :  { %v589_v33 = vpop.f32.mrf.mxu1  ;;  %v613_v35 = vpop.f32.mrf.mxu2 }
 0x21a   :  { %v590_v36 = vadd.f32 %v589_v33, %v564_v32  ;;  %v661_v39 = vpop.f32.mrf.mxu0 }
 0x21c   :  { %v614_v38 = vadd.f32 %v613_v35, %v590_v36  ;;  %v934_v35 = vsub.f32 %v914_v24, %v1416_v28 }
 0x21e   :  { %v638_v40 = vadd.f32 %v637_v37, %v614_v38 }
 0x220   :  { %v662_v41 = vadd.f32 %v661_v39, %v638_v40  ;;  %v935_v40 = vand.u32 4294901760, %v934_v35 }
 0x221   :  { %v683_v42 = vpop.f32.mrf.mxu1 }
 0x222   :  { %v684_v43 = vadd.f32 %v683_v42, %v662_v41  ;;  %v759_v52 = vpop.f32.mrf.mxu0  ;;  %v895_v42 = vpop.permute.xlu1 %894 }
 0x223   :  { %v709_v46 = vpop.f32.mrf.mxu2 }
 0x224   :  { %v832_v44 = vadd.f32 %v684_v43, %v1376_v5  ;;  %v710_v50 = vadd.f32 %v709_v46, %v535_v30 }
 0x226   :  { %v836_v45 = vrot.slane %v832_v44, 4 }
 0x228   :  { %v837_v47 = vadd.f32 %v836_v45, %v832_v44  ;;  %v936_v45 = vsub.f32 %v934_v35, %v935_v40 }
 0x229   :  { %v783_v55 = vpop.f32.mrf.mxu1 }
 0x22a   :  { %v838_v49 = vrot.slane %v837_v47, 2 }
 0x22b   :  { %v735_v51 = vpop.f32.mrf.mxu3  ;;  %v807_v58 = vpop.f32.mrf.mxu2 }
 0x22c   :  { %v839_v53 = vadd.f32 %v838_v49, %v837_v47  ;;  %v736_v54 = vadd.f32 %v735_v51, %v710_v50  ;;  %v937_v51 = vand.u32 4294901760, %v936_v45 }
 0x22e   :  { %v840_v56 = vrot.slane %v839_v53, 1  ;;  %v760_v57 = vadd.f32 %v759_v52, %v736_v54 }
 0x230   :  { %v841_v59 = vadd.f32 %v840_v56, %v839_v53  ;;  %v784_v60 = vadd.f32 %v783_v55, %v760_v57 }
 0x232   :  { %v848_v61 = vmul.f32 %v841_v59, %v1363_v48  ;;  %v808_v62 = vadd.f32 %v807_v58, %v784_v60 }
 0x233   :  { %v829_v63 = vpop.f32.mrf.mxu3 }
 0x234   :  { %v850_v5 = vsub.f32 %v832_v44, %v848_v61  ;;  %v830_v0 = vadd.f32 %v829_v63, %v808_v62  ;;  %v902_v44 = vpop.permute.xlu2 %901 }
 0x236   :  { %v852_v1 = vmul.f32 %v850_v5, %v850_v5  ;;  %v833_v2 = vadd.f32 %v830_v0, %v1381_v34 }
 0x238   :  { %v854_v3 = vrot.slane %v852_v1, 4  ;;  %v842_v4 = vrot.slane %v833_v2, 4 }
 0x23a   :  { %v855_v6 = vadd.f32 %v854_v3, %v852_v1  ;;  %v843_v7 = vadd.f32 %v842_v4, %v833_v2 }
 0x23c   :  { %v856_v8 = vrot.slane %v855_v6, 2  ;;  %v844_v9 = vrot.slane %v843_v7, 2 }
 0x23e   :  { %v857_v10 = vadd.f32 %v856_v8, %v855_v6  ;;  %v845_v11 = vadd.f32 %v844_v9, %v843_v7  ;;  %v911_v7 = vpop.permute.xlu1 %910 }
 0x240   :  { %v858_v12 = vrot.slane %v857_v10, 1  ;;  %v846_v13 = vrot.slane %v845_v11, 1 }
 0x242   :  { %v859_v14 = vadd.f32 %v858_v12, %v857_v10  ;;  %v847_v15 = vadd.f32 %v846_v13, %v845_v11 }
 0x244   :  { %v866_v16 = vmul.f32 %v859_v14, %v1363_v48  ;;  %v849_v17 = vmul.f32 %v847_v15, %v1363_v48 }
 0x246   :  { %v868_v18 = vadd.f32 1e-05, %v866_v16  ;;  %v851_v19 = vsub.f32 %v833_v2, %v849_v17 }
 0x248   :  { %1255 = vrsqrt.f32 %v868_v18  ;;  %v853_v34 = vmul.f32 %v851_v19, %v851_v19  ;;  %vm876_vm15 = vweird.f32 %v868_v18 }
 0x24a   :  { %v860_v20 = vrot.slane %v853_v34, 4 }
 0x24c   :  { %v861_v22 = vadd.f32 %v860_v20, %v853_v34 }
 0x24e   :  { %v1256_v23 = vpop.eup %1255  ;;  %v862_v25 = vrot.slane %v861_v22, 2 }
 0x24f   :  { %v871_v26 = vmul.f32 %v1256_v23, %v868_v18  ;;  %vm877_vm14 = vweird.f32 %v1256_v23 }
 0x250   :  { %v863_v27 = vadd.f32 %v862_v25, %v861_v22  ;;  %vm878_vm0 = vmor %vm876_vm15, %vm877_vm14 }
 0x251   :  { %v872_v29 = vmul.f32 %v1256_v23, %v871_v26 }
 0x252   :  { %v864_v30 = vrot.slane %v863_v27, 1 }
 0x253   :  { %v873_v31 = vmul.f32 0.5, %v872_v29 }
 0x254   :  { %v865_v32 = vadd.f32 %v864_v30, %v863_v27 }
 0x255   :  { %v874_v33 = vsub.f32 1.5, %v873_v31 }
 0x256   :  { %v867_v36 = vmul.f32 %v865_v32, %v1363_v48 }
 0x257   :  { %v875_v37 = vmul.f32 %v1256_v23, %v874_v33 }
 0x258   :  { %v869_v38 = vadd.f32 1e-05, %v867_v36 }
 0x259   :  { %v879_v39 = vsel %vm878_vm0, %v1256_v23, %v875_v37 }
 0x25a   :  { %v890_v41 = vmul.f32 %v879_v39, %v850_v5  ;;  %1257 = vrsqrt.f32 %v869_v38  ;;  %vm886_vm2 = vweird.f32 %v869_v38 }
 0x25c   :  { %v897_v43 = vmul.f32 %v895_v42, %v890_v41 }
 0x25e   :  { %v904_v46 = vadd.f32 %v902_v44, %v897_v43 }
 0x260   :  { %v1258_v47 = vpop.eup %1257  ;;  %v906_v49 = vmax.f32 %v904_v46, 0.0 }
 0x261   :  { %v881_v50 = vmul.f32 %v1258_v47, %v869_v38  ;;  %vm887_vm1 = vweird.f32 %v1258_v47 }
 0x262   :  { %v931_v52 = vand.u32 4294901760, %v906_v49  ;;  %vm888_vm3 = vmor %vm886_vm2, %vm887_vm1 }
 0x263   :  { %v882_v53 = vmul.f32 %v1258_v47, %v881_v50 }
 0x264   :  { %932 = vmatpush.msra.mxu0 %v931_v52  ;;  %1008 = vmatpush.msra.mxu3 %v931_v52  ;;  %v958_v48 = vsub.f32 %v906_v49, %v931_v52 }
 0x265   :  { %v883_v54 = vmul.f32 0.5, %v882_v53  ;;  %938 = vmatmul.f32.vlgmr.msra.gmra.mxu0 %v937_v51  ;;  %1012 = vmatmul.f32.vlgmr.msra.gmra.mxu3 %v935_v40 }
 0x266   :  { %985 = vmatpush.msra.mxu2 %v958_v48  ;;  %v959_v55 = vand.u32 4294901760, %v958_v48 }
 0x267   :  { %v884_v56 = vsub.f32 1.5, %v883_v54  ;;  %988 = vmatmul.f32.vlgmr.msra.gmra.mxu2 %v934_v35 }
 0x268   :  { %1034 = vmatpush.msrb.mxu0 %v959_v55  ;;  %v960_v57 = vsub.f32 %v958_v48, %v959_v55 }
 0x269   :  { %v885_v58 = vmul.f32 %v1258_v47, %v884_v56 }
 0x26a   :  { %v961_v59 = vand.u32 4294901760, %v960_v57 }
 0x26b   :  { %v889_v60 = vsel %vm888_vm3, %v1258_v47, %v885_v58 }
 0x26c   :  { %v891_v61 = vmul.f32 %v889_v60, %v851_v19  ;;  %962 = vmatpush.msra.mxu1 %v961_v59 }
 0x26d   :  { %964 = vmatmul.f32.vlgmr.msra.gmra.mxu1 %v1416_v28  ;;  %1036 = vmatmul.f32.vlgmr.msrb.gmra.mxu0 %v1416_v28 }
 0x26e   :  { %v898_v62 = vmul.f32 %v895_v42, %v891_v61  ;;  %1056 = vmatpush.msrb.mxu1 %v931_v52 }
 0x270   :  { %v905_v63 = vadd.f32 %v902_v44, %v898_v62 }
 0x272   :  { %v907_v5 = vmax.f32 %v905_v63, 0.0 }
 0x274   :  { %v1077_v0 = vand.u32 4294901760, %v907_v5 }
 0x275   :  { %1058 = vmatmul.f32.vlgmr.msrb.gmra.mxu1 %v1416_v28 }
 0x276   :  { %1078 = vmatpush.msrb.mxu2 %v1077_v0  ;;  %1154 = vmatpush.msra.mxu1 %v1077_v0  ;;  %v1104_v1 = vsub.f32 %v907_v5, %v1077_v0 }
 0x277   :  { %1084 = vmatmul.f32.vlgmr.msrb.gmra.mxu2 %v937_v51 }
 0x278   :  { %1131 = vmatpush.msra.mxu0 %v1104_v1  ;;  %v1105_v2 = vand.u32 4294901760, %v1104_v1 }
 0x279   :  { %1134 = vmatmul.f32.vlgmr.msra.gmra.mxu0 %v934_v35 }
 0x27a   :  { %1180 = vmatpush.msra.mxu2 %v1105_v2  ;;  %v1106_v3 = vsub.f32 %v1104_v1, %v1105_v2 }
 0x27c   :  { %v1107_v4 = vand.u32 4294901760, %v1106_v3 }
 0x27d   :  { %1158 = vmatmul.f32.vlgmr.msra.gmra.mxu1 %v935_v40 }
 0x27e   :  { %1108 = vmatpush.msrb.mxu3 %v1107_v4 }
 0x27f   :  { %1110 = vmatmul.f32.vlgmr.msrb.gmra.mxu3 %v1416_v28  ;;  %1182 = vmatmul.f32.vlgmr.msra.gmra.mxu2 %v1416_v28 }
 0x280   :  { %1202 = vmatpush.msra.mxu3 %v1077_v0 }
 0x287   :  { %1204 = vmatmul.f32.vlgmr.msra.gmra.mxu3 %v1416_v28 }
 0x2e2   :  { %v939_v6 = vpop.f32.mrf.mxu0 }
 0x2e3   :  { %v940_v8 = vadd.f32 %v939_v6, %v911_v7 }
 0x2e8   :  { %v1013_v12 = vpop.f32.mrf.mxu3 }
 0x2ea   :  { %v965_v9 = vpop.f32.mrf.mxu1  ;;  %v989_v10 = vpop.f32.mrf.mxu2 }
 0x2eb   :  { %v966_v11 = vadd.f32 %v965_v9, %v940_v8  ;;  %v1037_v14 = vpop.f32.mrf.mxu0 }
 0x2ed   :  { %v990_v13 = vadd.f32 %v989_v10, %v966_v11 }
 0x2ef   :  { %v1014_v15 = vadd.f32 %v1013_v12, %v990_v13 }
 0x2f1   :  { %v1038_v16 = vadd.f32 %v1037_v14, %v1014_v15 }
 0x2f2   :  { %v1059_v17 = vpop.f32.mrf.mxu1 }
 0x2f3   :  { %v1060_v18 = vadd.f32 %v1059_v17, %v1038_v16 }
 0x2f5   :  { %1208 = vst [vmem:[#allocation2] sm:$0xff] %v1060_v18 }
 0x2f6   :  { %v1135_v21 = vpop.f32.mrf.mxu0 }
 0x2fa   :  { %v1085_v19 = vpop.f32.mrf.mxu2  ;;  %v1159_v23 = vpop.f32.mrf.mxu1 }
 0x2fb   :  { %v1086_v34 = vadd.f32 %v1085_v19, %v911_v7 }
 0x302   :  { %v1111_v20 = vpop.f32.mrf.mxu3  ;;  %v1183_v25 = vpop.f32.mrf.mxu2 }
 0x303   :  { %v1112_v22 = vadd.f32 %v1111_v20, %v1086_v34 }
 0x305   :  { %v1136_v24 = vadd.f32 %v1135_v21, %v1112_v22 }
 0x307   :  { %v1160_v26 = vadd.f32 %v1159_v23, %v1136_v24 }
 0x309   :  { %v1184_v27 = vadd.f32 %v1183_v25, %v1160_v26 }
 0x30a   :  { %v1205_v28 = vpop.f32.mrf.mxu3 }
 0x30b   :  { %v1206_v29 = vadd.f32 %v1205_v28, %v1184_v27 }
 0x30d   :  { %1209 = vst [vmem:[#allocation2 + $0x8] sm:$0xff] %v1206_v29 }
 0x30e   :  { %1220 = dma.vmem_to_hbm [thread:$0]  %s1216_s20, 256, %s1218_s23, [#allocation3]  }
 0x30f   :  { %1283 = dma.done.wait [#allocation3], 256  }
 0x310   :  { %1284 = vsyncadd [#allocation3], 4294967040 }
 0x311   :  { %1225 = vsyncpa [#allocation3], 1 }

</bundles_post_ra>
